<compile_context>
chip_gen: v7x
topology: tpu7x:2x2x1
jax: 0.10.0
libtpu: 0.0.40
codegen_flags: <defaults>
</compile_context>

<pallas_src>
import functools

import jax
import jax.numpy as jnp
from jax import lax
from jax.experimental import pallas as pl
from jax.experimental.pallas import tpu as pltpu

BN_EPS = 1e-5
LRELU_SLOPE = 0.001
LANES = 128


# ---------------------------------------------------------------------------
# Fused kernel: whole MLP in one body, layers unrolled with a static loop.
# ref order: x, (w, b, gamma, beta) * num_layers, w_out, b_out, o
# ---------------------------------------------------------------------------
def _mlp_kernel(num_layers, *refs):
    x_ref = refs[0]
    w_out_ref = refs[1 + 4 * num_layers]
    b_out_ref = refs[2 + 4 * num_layers]
    o_ref = refs[3 + 4 * num_layers]

    h = x_ref[...]  # [B, F_pad], stays resident in vregs/VMEM
    for i in range(num_layers):
        w_ref, b_ref, g_ref, be_ref = refs[1 + 4 * i : 5 + 4 * i]
        # Linear (MXU, f32 accumulation)
        y = jnp.dot(h, w_ref[...], preferred_element_type=jnp.float32) + b_ref[...]
        # BatchNorm1d (training mode: current-batch mean, biased variance),
        # folded into a single scale/shift FMA.
        mean = jnp.mean(y, axis=0, keepdims=True)
        centered = y - mean
        var = jnp.mean(centered * centered, axis=0, keepdims=True)
        scale = g_ref[...] * lax.rsqrt(var + BN_EPS)   # rsqrt -> EUP slot
        shift = be_ref[...] - mean * scale
        y_bn = y * scale + shift
        # LeakyReLU(0.001)
        h = jnp.where(y_bn >= 0, y_bn, LRELU_SLOPE * y_bn)

    # Output head (F_out = 1): VPU multiply + lane reduction instead of an
    # N=1 MXU matmul.  b_out holds the scalar bias broadcast across lanes, so
    # the store is a full lane-dense [B, 128] slab (sliced to [B,1] outside).
    head = jnp.sum(h * w_out_ref[...], axis=-1, keepdims=True)  # [B, 1]
    o_ref[...] = head + b_out_ref[...]                          # -> [B, 128]


def _vmem_full(shape):
    ndim = len(shape)
    return pl.BlockSpec(
        shape,
        lambda: (0,) * ndim,
        memory_space=pltpu.MemorySpace.VMEM,
    )


# ---------------------------------------------------------------------------
# Single-dispatch wrapper (one jit, one pallas_call for the whole network).
# ---------------------------------------------------------------------------
@jax.jit
def mlp_forward(x, hidden_params, out_params):
    B, f_in = x.shape
    num_layers = len(hidden_params)
    f_in_pad = hidden_params[0][0].shape[0]
    x_pad = jnp.pad(x, ((0, 0), (0, f_in_pad - f_in)))

    flat = [x_pad]
    for (w, b, gamma, beta) in hidden_params:
        flat += [w, b, gamma, beta]
    w_out, b_out = out_params
    flat += [w_out, b_out]

    out_lanes = w_out.shape[1]
    kernel = functools.partial(_mlp_kernel, num_layers)
    out_pad = pl.pallas_call(
        kernel,
        out_shape=jax.ShapeDtypeStruct((B, out_lanes), jnp.float32),
        in_specs=[_vmem_full(a.shape) for a in flat],
        out_specs=_vmem_full((B, out_lanes)),
    )(*flat)
    return out_pad[:, :1]


# ---------------------------------------------------------------------------
# Parameter init (mirrors the PyTorch module, then zero-pads to 128 lanes).
# Zero padding keeps padded lanes exactly zero through every layer.
# ---------------------------------------------------------------------------
def _round_up(n, m):
    return ((n + m - 1) // m) * m


def _pad2d(a, rows, cols):
    return jnp.pad(a, ((0, rows - a.shape[0]), (0, cols - a.shape[1])))


def init_mlp_params(key, input_channels, hidden_channels, lanes=LANES):
    dims = [input_channels] + list(hidden_channels)
    dims_pad = [_round_up(d, lanes) for d in dims]

    hidden_params = []
    for i in range(len(hidden_channels)):
        key, kw, kb = jax.random.split(key, 3)
        f_in, f_out = dims[i], dims[i + 1]
        fp_in, fp_out = dims_pad[i], dims_pad[i + 1]
        limit = (6.0 / (f_in + f_out)) ** 0.5          # xavier_uniform, gain=1
        w = jax.random.uniform(kw, (f_in, f_out), jnp.float32, -limit, limit)
        bound = 1.0 / (f_in ** 0.5)                    # torch Linear bias init
        b = jax.random.uniform(kb, (1, f_out), jnp.float32, -bound, bound)
        gamma = jnp.ones((1, f_out), jnp.float32)      # BatchNorm1d weight
        beta = jnp.zeros((1, f_out), jnp.float32)      # BatchNorm1d bias
        hidden_params.append((
            _pad2d(w, fp_in, fp_out),
            _pad2d(b, 1, fp_out),
            _pad2d(gamma, 1, fp_out),
            _pad2d(beta, 1, fp_out),
        ))

    # Output head: stored as a row vector [1, F_last_pad]; bias broadcast.
    key, kw, kb = jax.random.split(key, 3)
    f_last = hidden_channels[-1]
    fp_last = dims_pad[-1]
    limit = (6.0 / (f_last + 1)) ** 0.5
    w_out = jax.random.uniform(kw, (1, f_last), jnp.float32, -limit, limit)
    bound = 1.0 / (f_last ** 0.5)
    b_val = jax.random.uniform(kb, (), jnp.float32, -bound, bound)
    w_out_pad = _pad2d(w_out, 1, fp_last)
    b_out_pad = jnp.full((1, fp_last), b_val, jnp.float32)
    return hidden_params, (w_out_pad, b_out_pad)


# ---------------------------------------------------------------------------
# Pure-JAX reference (uses the unpadded slices of the same parameters).
# ---------------------------------------------------------------------------
def mlp_reference(x, hidden_params, out_params, dims):
    h = x
    f_prev = dims[0]
    for (w, b, gamma, beta), f_out in zip(hidden_params, dims[1:]):
        y = h @ w[:f_prev, :f_out] + b[:, :f_out]
        mean = y.mean(0, keepdims=True)
        var = ((y - mean) ** 2).mean(0, keepdims=True)
        y = (y - mean) / jnp.sqrt(var + BN_EPS) * gamma[:, :f_out] + beta[:, :f_out]
        h = jnp.where(y >= 0, y, LRELU_SLOPE * y)
        f_prev = f_out
    w_out, b_out = out_params
    return h @ w_out[:, :f_prev].T + b_out[:, :1]


# ---------------------------------------------------------------------------
if __name__ == "__main__":
    key = jax.random.PRNGKey(0)
    key, kx, kp = jax.random.split(key, 3)

    B = 8                       # multiple of 8 so the [B,128] block is sublane-aligned
    input_channels = 16
    hidden_channels = [32, 32]

    x = jax.random.normal(kx, (B, input_channels), jnp.float32)
    hidden_params, out_params = init_mlp_params(kp, input_channels, hidden_channels)

    out = mlp_forward(x, hidden_params, out_params)
    out = jax.block_until_ready(out)
    assert out.shape == (B, 1), out.shape

    ref = mlp_reference(x, hidden_params, out_params,
                        [input_channels] + hidden_channels)
    assert bool(jnp.all(jnp.isfinite(out)))
    assert bool(jnp.allclose(out, ref, rtol=2e-3, atol=2e-3)), (out, ref)

    # TODO(synk): if batch is ever tiled over a grid, BN statistics must use a
    # two-pass / accumulator pattern so they still cover the full batch.
    print("KERNEL_OK")
</pallas_src>

<mosaic_0001>
module attributes {stable_mosaic.version = 11 : i64} {
  func.func @_mlp_kernel(%arg0: memref<8x128xf32, #tpu.memory_space<vmem>>, %arg1: memref<128x128xf32, #tpu.memory_space<vmem>>, %arg2: memref<1x128xf32, #tpu.memory_space<vmem>>, %arg3: memref<1x128xf32, #tpu.memory_space<vmem>>, %arg4: memref<1x128xf32, #tpu.memory_space<vmem>>, %arg5: memref<128x128xf32, #tpu.memory_space<vmem>>, %arg6: memref<1x128xf32, #tpu.memory_space<vmem>>, %arg7: memref<1x128xf32, #tpu.memory_space<vmem>>, %arg8: memref<1x128xf32, #tpu.memory_space<vmem>>, %arg9: memref<1x128xf32, #tpu.memory_space<vmem>>, %arg10: memref<1x128xf32, #tpu.memory_space<vmem>>, %arg11: memref<8x128xf32, #tpu.memory_space<vmem>>) attributes {dimension_semantics = [], scalar_prefetch = 0 : i64, scratch_operands = 0 : i64, tpu.core_type = #tpu.core_type<tc>} {
    %c0 = arith.constant 0 : index
    %c0_0 = arith.constant 0 : index
    %0 = vector.load %arg0[%c0, %c0_0] : memref<8x128xf32, #tpu.memory_space<vmem>>, vector<8x128xf32>
    %c0_1 = arith.constant 0 : index
    %c0_2 = arith.constant 0 : index
    %1 = vector.load %arg1[%c0_1, %c0_2] : memref<128x128xf32, #tpu.memory_space<vmem>>, vector<128x128xf32>
    %cst = arith.constant dense<0.000000e+00> : vector<8x128xf32>
    %2 = tpu.matmul %0, %1, %cst {dimension_numbers = #tpu.dot_dimension_numbers<[1], [0], [0], [1], [0, 0, 1, 1], [], []>} : vector<8x128xf32>, vector<128x128xf32>, vector<8x128xf32> -> vector<8x128xf32>
    %c0_3 = arith.constant 0 : index
    %c0_4 = arith.constant 0 : index
    %3 = vector.load %arg2[%c0_3, %c0_4] : memref<1x128xf32, #tpu.memory_space<vmem>>, vector<1x128xf32>
    %4 = vector.broadcast %3 : vector<1x128xf32> to vector<8x128xf32>
    %5 = arith.addf %2, %4 : vector<8x128xf32>
    %cst_5 = arith.constant dense<0.000000e+00> : vector<128xf32>
    %6 = vector.multi_reduction <add>, %5, %cst_5 [0] : vector<8x128xf32> to vector<128xf32>
    %7 = vector.shape_cast %6 : vector<128xf32> to vector<1x128xf32>
    %cst_6 = arith.constant 8.000000e+00 : f32
    %8 = vector.broadcast %cst_6 : f32 to vector<1x128xf32>
    %9 = arith.divf %7, %8 : vector<1x128xf32>
    %10 = vector.broadcast %9 : vector<1x128xf32> to vector<8x128xf32>
    %11 = arith.subf %5, %10 : vector<8x128xf32>
    %12 = arith.mulf %11, %11 : vector<8x128xf32>
    %cst_7 = arith.constant dense<0.000000e+00> : vector<128xf32>
    %13 = vector.multi_reduction <add>, %12, %cst_7 [0] : vector<8x128xf32> to vector<128xf32>
    %14 = vector.shape_cast %13 : vector<128xf32> to vector<1x128xf32>
    %cst_8 = arith.constant 8.000000e+00 : f32
    %15 = vector.broadcast %cst_8 : f32 to vector<1x128xf32>
    %16 = arith.divf %14, %15 : vector<1x128xf32>
    %c0_9 = arith.constant 0 : index
    %c0_10 = arith.constant 0 : index
    %17 = vector.load %arg3[%c0_9, %c0_10] : memref<1x128xf32, #tpu.memory_space<vmem>>, vector<1x128xf32>
    %cst_11 = arith.constant 9.99999974E-6 : f32
    %18 = vector.broadcast %cst_11 : f32 to vector<1x128xf32>
    %19 = arith.addf %16, %18 : vector<1x128xf32>
    %20 = math.rsqrt %19 : vector<1x128xf32>
    %21 = arith.mulf %17, %20 : vector<1x128xf32>
    %c0_12 = arith.constant 0 : index
    %c0_13 = arith.constant 0 : index
    %22 = vector.load %arg4[%c0_12, %c0_13] : memref<1x128xf32, #tpu.memory_space<vmem>>, vector<1x128xf32>
    %23 = arith.mulf %9, %21 : vector<1x128xf32>
    %24 = arith.subf %22, %23 : vector<1x128xf32>
    %25 = vector.broadcast %21 : vector<1x128xf32> to vector<8x128xf32>
    %26 = arith.mulf %5, %25 : vector<8x128xf32>
    %27 = vector.broadcast %24 : vector<1x128xf32> to vector<8x128xf32>
    %28 = arith.addf %26, %27 : vector<8x128xf32>
    %cst_14 = arith.constant 0.000000e+00 : f32
    %29 = vector.broadcast %cst_14 : f32 to vector<8x128xf32>
    %30 = arith.cmpf oge, %28, %29 : vector<8x128xf32>
    %cst_15 = arith.constant 1.000000e-03 : f32
    %31 = vector.broadcast %cst_15 : f32 to vector<8x128xf32>
    %32 = arith.mulf %31, %28 : vector<8x128xf32>
    %33 = arith.select %30, %28, %32 : vector<8x128xi1>, vector<8x128xf32>
    %c0_16 = arith.constant 0 : index
    %c0_17 = arith.constant 0 : index
    %34 = vector.load %arg5[%c0_16, %c0_17] : memref<128x128xf32, #tpu.memory_space<vmem>>, vector<128x128xf32>
    %cst_18 = arith.constant dense<0.000000e+00> : vector<8x128xf32>
    %35 = tpu.matmul %33, %34, %cst_18 {dimension_numbers = #tpu.dot_dimension_numbers<[1], [0], [0], [1], [0, 0, 1, 1], [], []>} : vector<8x128xf32>, vector<128x128xf32>, vector<8x128xf32> -> vector<8x128xf32>
    %c0_19 = arith.constant 0 : index
    %c0_20 = arith.constant 0 : index
    %36 = vector.load %arg6[%c0_19, %c0_20] : memref<1x128xf32, #tpu.memory_space<vmem>>, vector<1x128xf32>
    %37 = vector.broadcast %36 : vector<1x128xf32> to vector<8x128xf32>
    %38 = arith.addf %35, %37 : vector<8x128xf32>
    %cst_21 = arith.constant dense<0.000000e+00> : vector<128xf32>
    %39 = vector.multi_reduction <add>, %38, %cst_21 [0] : vector<8x128xf32> to vector<128xf32>
    %40 = vector.shape_cast %39 : vector<128xf32> to vector<1x128xf32>
    %cst_22 = arith.constant 8.000000e+00 : f32
    %41 = vector.broadcast %cst_22 : f32 to vector<1x128xf32>
    %42 = arith.divf %40, %41 : vector<1x128xf32>
    %43 = vector.broadcast %42 : vector<1x128xf32> to vector<8x128xf32>
    %44 = arith.subf %38, %43 : vector<8x128xf32>
    %45 = arith.mulf %44, %44 : vector<8x128xf32>
    %cst_23 = arith.constant dense<0.000000e+00> : vector<128xf32>
    %46 = vector.multi_reduction <add>, %45, %cst_23 [0] : vector<8x128xf32> to vector<128xf32>
    %47 = vector.shape_cast %46 : vector<128xf32> to vector<1x128xf32>
    %cst_24 = arith.constant 8.000000e+00 : f32
    %48 = vector.broadcast %cst_24 : f32 to vector<1x128xf32>
    %49 = arith.divf %47, %48 : vector<1x128xf32>
    %c0_25 = arith.constant 0 : index
    %c0_26 = arith.constant 0 : index
    %50 = vector.load %arg7[%c0_25, %c0_26] : memref<1x128xf32, #tpu.memory_space<vmem>>, vector<1x128xf32>
    %cst_27 = arith.constant 9.99999974E-6 : f32
    %51 = vector.broadcast %cst_27 : f32 to vector<1x128xf32>
    %52 = arith.addf %49, %51 : vector<1x128xf32>
    %53 = math.rsqrt %52 : vector<1x128xf32>
    %54 = arith.mulf %50, %53 : vector<1x128xf32>
    %c0_28 = arith.constant 0 : index
    %c0_29 = arith.constant 0 : index
    %55 = vector.load %arg8[%c0_28, %c0_29] : memref<1x128xf32, #tpu.memory_space<vmem>>, vector<1x128xf32>
    %56 = arith.mulf %42, %54 : vector<1x128xf32>
    %57 = arith.subf %55, %56 : vector<1x128xf32>
    %58 = vector.broadcast %54 : vector<1x128xf32> to vector<8x128xf32>
    %59 = arith.mulf %38, %58 : vector<8x128xf32>
    %60 = vector.broadcast %57 : vector<1x128xf32> to vector<8x128xf32>
    %61 = arith.addf %59, %60 : vector<8x128xf32>
    %cst_30 = arith.constant 0.000000e+00 : f32
    %62 = vector.broadcast %cst_30 : f32 to vector<8x128xf32>
    %63 = arith.cmpf oge, %61, %62 : vector<8x128xf32>
    %cst_31 = arith.constant 1.000000e-03 : f32
    %64 = vector.broadcast %cst_31 : f32 to vector<8x128xf32>
    %65 = arith.mulf %64, %61 : vector<8x128xf32>
    %66 = arith.select %63, %61, %65 : vector<8x128xi1>, vector<8x128xf32>
    %c0_32 = arith.constant 0 : index
    %c0_33 = arith.constant 0 : index
    %67 = vector.load %arg9[%c0_32, %c0_33] : memref<1x128xf32, #tpu.memory_space<vmem>>, vector<1x128xf32>
    %68 = vector.broadcast %67 : vector<1x128xf32> to vector<8x128xf32>
    %69 = arith.mulf %66, %68 : vector<8x128xf32>
    %cst_34 = arith.constant dense<0.000000e+00> : vector<8xf32>
    %70 = vector.multi_reduction <add>, %69, %cst_34 [1] : vector<8x128xf32> to vector<8xf32>
    %71 = vector.shape_cast %70 : vector<8xf32> to vector<8x1xf32>
    %c0_35 = arith.constant 0 : index
    %c0_36 = arith.constant 0 : index
    %72 = vector.load %arg10[%c0_35, %c0_36] : memref<1x128xf32, #tpu.memory_space<vmem>>, vector<1x128xf32>
    %73 = vector.broadcast %71 : vector<8x1xf32> to vector<8x128xf32>
    %74 = vector.broadcast %72 : vector<1x128xf32> to vector<8x128xf32>
    %75 = arith.addf %73, %74 : vector<8x128xf32>
    %c0_37 = arith.constant 0 : index
    %c0_38 = arith.constant 0 : index
    %76 = vector.load %arg11[%c0_37, %c0_38] : memref<8x128xf32, #tpu.memory_space<vmem>>, vector<8x128xf32>
    tpu.vector_store %arg11[%c0_37, %c0_38], %75 {strides = array<i32>} : memref<8x128xf32, #tpu.memory_space<vmem>>, vector<8x128xf32>,
    return
  }
}

</mosaic_0001>

<bundles_post_ra>
// kernel: mlp_forward.1
= control target key start
LH: loop header
LB: loop body
LE: loop exit
PB: predicated region body
PF: predicated region fallthrough
CT: control target
= control target key end

     0   :  { %16 = vsyncpa [#allocation3], 0  ;;  %s711_s0 = inlined_call_operand.vmem [shape: f32[8,128], index: 0, kind: input, shape index: {}]   ;;  %s712_s1 = inlined_call_operand.hbm [shape: f32[128,128], index: 1, kind: input, shape index: {}]   ;;  %s713_s2 = inlined_call_operand.vmem [shape: f32[1,128], index: 2, kind: input, shape index: {}]   ;;  %s714_s3 = inlined_call_operand.vmem [shape: f32[1,128], index: 3, kind: input, shape index: {}]   ;;  %s715_s4 = inlined_call_operand.vmem [shape: f32[1,128], index: 4, kind: input, shape index: {}]   ;;  %s716_s5 = inlined_call_operand.hbm [shape: f32[128,128], index: 5, kind: input, shape index: {}]   ;;  %s717_s6 = inlined_call_operand.vmem [shape: f32[1,128], index: 6, kind: input, shape index: {}]   ;;  %s718_s7 = inlined_call_operand.vmem [shape: f32[1,128], index: 7, kind: input, shape index: {}]   ;;  %s719_s8 = inlined_call_operand.vmem [shape: f32[1,128], index: 8, kind: input, shape index: {}]   ;;  %s720_s9 = inlined_call_operand.vmem [shape: f32[1,128], index: 9, kind: input, shape index: {}]   ;;  %s721_s10 = inlined_call_operand.vmem [shape: f32[1,128], index: 10, kind: input, shape index: {}]   ;;  %s722_s11 = inlined_call_operand.vmem [shape: f32[8,128], index: 11, kind: output, shape index: {}]  }
   0x1   :  { %17 = vsyncpa [#allocation5], 0  ;;  %s574_s17 = smov [#allocation2]   ;;  %s526_s21 = scalar_lea.hbm %s712_s1, 2048 }
   0x2   :  { %s25_s18 = sshll.u32 %s574_s17, 4  ;;  %p527_p0 = scmp.ne.s32.totalorder %s712_s1, %s526_s21  ;;  %s26_s18 = int_to_ptr.vmem [resolvable:$true] %s25_s18 }
   0x3   :  { %p530_p1 = scmp.lt.u32.totalorder %s526_s21, %s712_s1 }
   0x5   :  { %p532_p2 = pnand %p530_p1, %p527_p0 }
   0x7   :  { %535 = shalt.err (!%p532_p2)
}
   0x8   :  { %s536_s26 = scalar_lea.vmem %s26_s18, 2048  ;;  %p541_p4 = scmp.lt.s32.totalorder %s26_s18, %s26_s18 }
   0x9   :  { %p537_p3 = scmp.ne.s32.totalorder %s26_s18, %s536_s26  ;;  %p542_p5 = scmp.lt.s32.totalorder %s536_s26, %s536_s26 }
   0xb   :  { %p543_p6 = por %p542_p5, %p541_p4 }
   0xd   :  { %p544_p7 = pnand %p543_p6, %p537_p3 }
   0xf   :  { %547 = shalt.err (!%p544_p7)
}
  0x10   :  { %s575_s27 = smov 128   ;;  %s576_s28 = smov 8  }
  0x11   :  { %31 = dma.hbm_to_vmem [thread:$0]  %s712_s1, 2048, %s26_s18, [#allocation3], %s575_s27, %s575_s27, %s576_s28  }
  0x12   :  { %s577_s12 = smov [#allocation4]   ;;  %s548_s16 = scalar_lea.hbm %s716_s5, 2048 }
  0x13   :  { %s43_s13 = sshll.u32 %s577_s12, 4  ;;  %p549_p8 = scmp.ne.s32.totalorder %s716_s5, %s548_s16  ;;  %s44_s13 = int_to_ptr.vmem [resolvable:$true] %s43_s13 }
  0x14   :  { %p552_p9 = scmp.lt.u32.totalorder %s548_s16, %s716_s5 }
  0x16   :  { %p554_p10 = pnand %p552_p9, %p549_p8 }
  0x18   :  { %557 = shalt.err (!%p554_p10)
}
  0x19   :  { %s558_s22 = scalar_lea.vmem %s44_s13, 2048  ;;  %p563_p12 = scmp.lt.s32.totalorder %s44_s13, %s44_s13 }
  0x1a   :  { %p559_p11 = scmp.ne.s32.totalorder %s44_s13, %s558_s22  ;;  %p564_p13 = scmp.lt.s32.totalorder %s558_s22, %s558_s22 }
  0x1c   :  { %p565_p0 = por %p564_p13, %p563_p12 }
  0x1e   :  { %p566_p1 = pnand %p565_p0, %p559_p11 }
  0x20   :  { %569 = shalt.err (!%p566_p1)
}
  0x21   :  { %49 = dma.hbm_to_vmem [thread:$0]  %s716_s5, 2048, %s44_s13, [#allocation5], %s575_s27, %s575_s27, %s576_s28  }
  0x22   :  { %570 = dma.done.wait [#allocation3], 2048  }
  0x23   :  { %571 = vsyncadd [#allocation3], 4294965248 }
  0x24   :  { %572 = dma.done.wait [#allocation5], 2048  }
  0x25   :  { %573 = vsyncadd [#allocation5], 4294965248  ;;  %v578_v0 = vmov 0.0|0.0   ;;  %vm579_vm0 = vmmov 0   ;;  %v580_v1 = vmov 0.0   ;;  %v67_v2 = vld [vmem:[#allocation2] sm:$0xff] }
  0x26   :  { %467 = vmatprep.subr.bf16.mxu0 %v578_v0  ;;  %429 = vmatprep.mubr.msk.f32.mxu0 %vm579_vm0, %v580_v1  ;;  %v68_v3 = vld [vmem:[#allocation2 + $0x8] sm:$0xff]  ;;  %v69_v4 = vld [vmem:[#allocation2 + $0x10] sm:$0xff]  ;;  %v70_v6 = vld [vmem:[#allocation2 + $0x18] sm:$0xff] }
  0x27   :  { %491 = vmatprep.subr.bf16.mxu1 %v578_v0  ;;  %464 = vmatprep.mubr.msk.f32.mxu1 %vm579_vm0, %v580_v1  ;;  %v468_v5 = vpack.c.bf16 %v68_v3, %v67_v2  ;;  %v471_v7 = vpack.c.bf16 %v70_v6, %v69_v4  ;;  %v71_v8 = vld [vmem:[#allocation2 + $0x20] sm:$0xff]  ;;  %v72_v9 = vld [vmem:[#allocation2 + $0x28] sm:$0xff]  ;;  %v73_v11 = vld [vmem:[#allocation2 + $0x30] sm:$0xff] }
  0x28   :  { %v474_v10 = vpack.c.bf16 %v72_v9, %v71_v8  ;;  %v74_v12 = vld [vmem:[#allocation2 + $0x38] sm:$0xff]  ;;  %v75_v14 = vld [vmem:[#allocation2 + $0x40] sm:$0xff]  ;;  %v76_v15 = vld [vmem:[#allocation2 + $0x48] sm:$0xff]  ;;  %v185_v8 = vlaneseq }
  0x29   :  { %469 = vmatpush3.bf16.msra.mxu0 %v468_v5  ;;  %v477_v13 = vpack.c.bf16 %v74_v12, %v73_v11  ;;  %v480_v16 = vpack.c.bf16 %v76_v15, %v75_v14  ;;  %v77_v17 = vld [vmem:[#allocation2 + $0x50] sm:$0xff]  ;;  %v78_v18 = vld [vmem:[#allocation2 + $0x58] sm:$0xff]  ;;  %v79_v20 = vld [vmem:[#allocation2 + $0x60] sm:$0xff] }
  0x2a   :  { %470 = vmatprep.subr.bf16.mxu0 %v578_v0  ;;  %v483_v19 = vpack.c.bf16 %v78_v18, %v77_v17  ;;  %v80_v21 = vld [vmem:[#allocation2 + $0x68] sm:$0xff]  ;;  %v81_v23 = vld [vmem:[#allocation2 + $0x70] sm:$0xff]  ;;  %v82_v24 = vld [vmem:[#allocation2 + $0x78] sm:$0xff]  ;;  %v186_v9 = vshrl.u32 %v185_v8, 7 }
  0x2b   :  { %v486_v22 = vpack.c.bf16 %v80_v21, %v79_v20  ;;  %v489_v25 = vpack.c.bf16 %v82_v24, %v81_v23  ;;  %v66_v26 = vld [vmem:[%s711_s0] sm:$0xff]  ;;  %v202_v28 = vld [vmem:[#allocation4 + $0x8] sm:$0xff]  ;;  %v203_v30 = vld [vmem:[#allocation4 + $0x10] sm:$0xff] }
  0x2c   :  { %v201_v27 = vld [vmem:[#allocation4] sm:$0xff]  ;;  %v204_v31 = vld [vmem:[#allocation4 + $0x18] sm:$0xff]  ;;  %v206_v34 = vld [vmem:[#allocation4 + $0x28] sm:$0xff]  ;;  %v187_v11 = vsub.s32 0, %v186_v9 }
  0x2d   :  { %472 = vmatpush3.bf16.msra.mxu0 %v471_v7  ;;  %v492_v29 = vpack.c.bf16 %v202_v28, %v201_v27  ;;  %v495_v32 = vpack.c.bf16 %v204_v31, %v203_v30  ;;  %v205_v33 = vld [vmem:[#allocation4 + $0x20] sm:$0xff]  ;;  %v207_v36 = vld [vmem:[#allocation4 + $0x30] sm:$0xff]  ;;  %v208_v37 = vld [vmem:[#allocation4 + $0x38] sm:$0xff] }
  0x2e   :  { %473 = vmatprep.subr.bf16.mxu0 %v578_v0  ;;  %v498_v35 = vpack.c.bf16 %v206_v34, %v205_v33  ;;  %v501_v38 = vpack.c.bf16 %v208_v37, %v207_v36  ;;  %v209_v39 = vld [vmem:[#allocation4 + $0x40] sm:$0xff]  ;;  %v210_v40 = vld [vmem:[#allocation4 + $0x48] sm:$0xff]  ;;  %v211_v42 = vld [vmem:[#allocation4 + $0x50] sm:$0xff] }
  0x2f   :  { %493 = vmatpush3.bf16.msra.mxu1 %v492_v29  ;;  %v504_v41 = vpack.c.bf16 %v210_v40, %v209_v39  ;;  %v212_v43 = vld [vmem:[#allocation4 + $0x58] sm:$0xff]  ;;  %v213_v45 = vld [vmem:[#allocation4 + $0x60] sm:$0xff]  ;;  %v214_v46 = vld [vmem:[#allocation4 + $0x68] sm:$0xff] }
  0x30   :  { %494 = vmatprep.subr.bf16.mxu1 %v578_v0  ;;  %v507_v44 = vpack.c.bf16 %v212_v43, %v211_v42  ;;  %v510_v47 = vpack.c.bf16 %v214_v46, %v213_v45  ;;  %v215_v48 = vld [vmem:[#allocation4 + $0x70] sm:$0xff]  ;;  %v216_v49 = vld [vmem:[#allocation4 + $0x78] sm:$0xff]  ;;  %v359_v51 = vld [vmem:[%s713_s2] ss:$0 sm:$0xff] }
  0x31   :  { %475 = vmatpush3.bf16.msra.mxu0 %v474_v10  ;;  %v513_v50 = vpack.c.bf16 %v216_v49, %v215_v48  ;;  %v177_v10 = vld [vmem:[%s714_s3] sm:$0x1] }
  0x32   :  { %476 = vmatprep.subr.bf16.mxu0 %v578_v0  ;;  %v181_v14 = vld [vmem:[%s715_s4] sm:$0x1] }
  0x33   :  { %496 = vmatpush3.bf16.msra.mxu1 %v495_v32  ;;  %v360_v23 = vld [vmem:[%s717_s6] ss:$0 sm:$0xff] }
  0x34   :  { %497 = vmatprep.subr.bf16.mxu1 %v578_v0 }
  0x35   :  { %478 = vmatpush3.bf16.msra.mxu0 %v477_v13 }
  0x36   :  { %479 = vmatprep.subr.bf16.mxu0 %v578_v0 }
  0x37   :  { %499 = vmatpush3.bf16.msra.mxu1 %v498_v35 }
  0x38   :  { %500 = vmatprep.subr.bf16.mxu1 %v578_v0 }
  0x39   :  { %481 = vmatpush3.bf16.msra.mxu0 %v480_v16 }
  0x3a   :  { %482 = vmatprep.subr.bf16.mxu0 %v578_v0 }
  0x3b   :  { %502 = vmatpush3.bf16.msra.mxu1 %v501_v38 }
  0x3c   :  { %503 = vmatprep.subr.bf16.mxu1 %v578_v0 }
  0x3d   :  { %484 = vmatpush3.bf16.msra.mxu0 %v483_v19 }
  0x3e   :  { %485 = vmatprep.subr.bf16.mxu0 %v578_v0 }
  0x3f   :  { %505 = vmatpush3.bf16.msra.mxu1 %v504_v41 }
  0x40   :  { %506 = vmatprep.subr.bf16.mxu1 %v578_v0 }
  0x41   :  { %487 = vmatpush3.bf16.msra.mxu0 %v486_v22 }
  0x42   :  { %488 = vmatprep.subr.bf16.mxu0 %v578_v0 }
  0x43   :  { %508 = vmatpush3.bf16.msra.mxu1 %v507_v44  ;;  %v310_v44 = vld [vmem:[%s718_s7] sm:$0x1] }
  0x44   :  { %509 = vmatprep.subr.bf16.mxu1 %v578_v0 }
  0x45   :  { %490 = vmatpush3.bf16.msra.mxu0 %v489_v25 }
  0x47   :  { %511 = vmatpush3.bf16.msra.mxu1 %v510_v47  ;;  %v314_v47 = vld [vmem:[%s719_s8] sm:$0x1] }
  0x48   :  { %430 = vmatmul.mubr.f32.vlgmr.msra.gmra.mrb[0].mxu0 %v66_v26  ;;  %512 = vmatprep.subr.bf16.mxu1 %v578_v0 }
  0x4b   :  { %514 = vmatpush3.bf16.msra.mxu1 %v513_v50 }
 0x11b   :  { %v156_v52 = vpop.f32.mrb[0].mxu0 }
 0x11c   :  { %v157_v53 = vadd.f32 %v359_v51, %v156_v52  ;;  %v431_v54 = vpop.f32.mrb[1].mxu0 }
 0x11e   :  { %v160_v55 = vrot.slane %v157_v53, 4 }
 0x120   :  { %v161_v56 = vadd.f32 %v160_v55, %v157_v53  ;;  %v361_v55 = vld [vmem:[%s720_s9] ss:$0 sm:$0xff] }
 0x122   :  { %v162_v57 = vrot.slane %v161_v56, 2 }
 0x124   :  { %v163_v58 = vadd.f32 %v162_v57, %v161_v56 }
 0x126   :  { %v164_v59 = vrot.slane %v163_v58, 1 }
 0x128   :  { %v165_v60 = vadd.f32 %v164_v59, %v163_v58  ;;  %v362_v58 = vld [vmem:[%s721_s10] ss:$0 sm:$0xff] }
 0x12a   :  { %v167_v61 = vmul.f32 0.125, %v165_v60 }
 0x12c   :  { %v168_v62 = vsub.f32 %v157_v53, %v167_v61 }
 0x12e   :  { %v169_v63 = vmul.f32 %v168_v62, %v168_v62 }
 0x130   :  { %v170_v1 = vrot.slane %v169_v63, 4 }
 0x132   :  { %v171_v2 = vadd.f32 %v170_v1, %v169_v63 }
 0x134   :  { %v172_v0 = vrot.slane %v171_v2, 2 }
 0x136   :  { %v173_v3 = vadd.f32 %v172_v0, %v171_v2 }
 0x138   :  { %v174_v4 = vrot.slane %v173_v3, 1 }
 0x13a   :  { %v175_v5 = vadd.f32 %v174_v4, %v173_v3 }
 0x13c   :  { %v176_v6 = vmul.f32 0.125, %v175_v5 }
 0x13e   :  { %v178_v7 = vadd.f32 1e-05, %v176_v6 }
 0x140   :  { %522 = vrsqrt.f32 %v178_v7 }
 0x14a   :  { %v523_v12 = vpop.eup %522 }
 0x14b   :  { %v180_v13 = vmul.f32 %v523_v12, %v177_v10 }
 0x14d   :  { %v182_v15 = vmul.f32 %v180_v13, %v167_v61  ;;  %v188_v16 = vrot.slane %v180_v13, %v187_v11 }
 0x14f   :  { %v183_v17 = vsub.f32 %v181_v14, %v182_v15  ;;  %v190_v18 = vmul.f32 %v188_v16, %v157_v53 }
 0x151   :  { %v195_v19 = vrot.slane %v183_v17, %v187_v11 }
 0x153   :  { %v197_v20 = vadd.f32 %v195_v19, %v190_v18 }
 0x155   :  { %vm198_vm1 = vcmp.ge.f32.partialorder %v197_v20, 0.0  ;;  %v199_v21 = vmul.f32 0.001, %v197_v20 }
 0x157   :  { %v200_v22 = vsel %vm198_vm1, %v197_v20, %v199_v21 }
 0x158   :  { %465 = vmatmul.mubr.f32.vlgmr.msra.gmra.mrb[0].mxu1 %v200_v22 }
 0x22b   :  { %v290_v24 = vpop.f32.mrb[0].mxu1 }
 0x22c   :  { %v291_v25 = vadd.f32 %v360_v23, %v290_v24  ;;  %v466_v26 = vpop.f32.mrb[1].mxu1 }
 0x22e   :  { %v294_v27 = vrot.slane %v291_v25, 4 }
 0x230   :  { %v295_v28 = vadd.f32 %v294_v27, %v291_v25 }
 0x232   :  { %v296_v29 = vrot.slane %v295_v28, 2 }
 0x234   :  { %v297_v30 = vadd.f32 %v296_v29, %v295_v28 }
 0x236   :  { %v298_v31 = vrot.slane %v297_v30, 1 }
 0x238   :  { %v299_v32 = vadd.f32 %v298_v31, %v297_v30 }
 0x23a   :  { %v300_v33 = vmul.f32 0.125, %v299_v32 }
 0x23c   :  { %v301_v34 = vsub.f32 %v291_v25, %v300_v33 }
 0x23e   :  { %v302_v35 = vmul.f32 %v301_v34, %v301_v34 }
 0x240   :  { %v303_v36 = vrot.slane %v302_v35, 4 }
 0x242   :  { %v304_v37 = vadd.f32 %v303_v36, %v302_v35 }
 0x244   :  { %v305_v38 = vrot.slane %v304_v37, 2 }
 0x246   :  { %v306_v39 = vadd.f32 %v305_v38, %v304_v37 }
 0x248   :  { %v307_v40 = vrot.slane %v306_v39, 1 }
 0x24a   :  { %v308_v41 = vadd.f32 %v307_v40, %v306_v39 }
 0x24c   :  { %v309_v42 = vmul.f32 0.125, %v308_v41 }
 0x24e   :  { %v311_v43 = vadd.f32 1e-05, %v309_v42 }
 0x250   :  { %524 = vrsqrt.f32 %v311_v43 }
 0x25a   :  { %v525_v45 = vpop.eup %524 }
 0x25b   :  { %v313_v46 = vmul.f32 %v525_v45, %v310_v44 }
 0x25d   :  { %v315_v48 = vmul.f32 %v313_v46, %v300_v33  ;;  %v321_v49 = vrot.slane %v313_v46, %v187_v11 }
 0x25f   :  { %v316_v50 = vsub.f32 %v314_v47, %v315_v48  ;;  %v323_v51 = vmul.f32 %v321_v49, %v291_v25 }
 0x261   :  { %v328_v52 = vrot.slane %v316_v50, %v187_v11 }
 0x263   :  { %v330_v53 = vadd.f32 %v328_v52, %v323_v51 }
 0x265   :  { %vm331_vm2 = vcmp.ge.f32.partialorder %v330_v53, 0.0  ;;  %v332_v54 = vmul.f32 0.001, %v330_v53 }
 0x267   :  { %v333_v56 = vsel %vm331_vm2, %v330_v53, %v332_v54 }
 0x268   :  { %v341_v57 = vmul.f32 %v361_v55, %v333_v56 }
 0x26a   :  { %342 = vadd.xlane.f32.xlu0 %v341_v57 }
 0x2f7   :  { %v343_v59 = vpop.xlane.xlu0 %342 }
 0x2f8   :  { %v351_v60 = vadd.f32 %v362_v58, %v343_v59 }
 0x2fa   :  { %352 = vst [vmem:[%s722_s11] sm:$0xff] %v351_v60 }
 0x2fb   :  { %357 = vsyncpa [#allocation3], 1 }
 0x2fc   :  { %358 = vsyncpa [#allocation5], 1 }

</bundles_post_ra>
